<compile_context>
chip_gen: v5e
topology: v5e:2x2
jax: 0.10.0
libtpu: 0.0.40
codegen_flags: <defaults>
</compile_context>

<pallas_src>
import functools

import jax
import jax.numpy as jnp
from jax.experimental import pallas as pl
from jax.experimental.pallas import tpu as pltpu


def tower_kernel(x_ref, w1_ref, b1_ref, w2_ref, b2_ref, o_ref):
    # x_ref  : (TB, D_in)        VMEM tile of the batch
    # w1_ref : (D_in, H_pad)     full fc1 weight (transposed, padded)
    # b1_ref : (1, H_pad)        f32
    # w2_ref : (H_pad, Dout_pad) full fc2 weight (transposed, padded)
    # b2_ref : (1, Dout_pad)     f32
    # o_ref  : (TB, Dout_pad)
    h = jnp.dot(x_ref[...], w1_ref[...], preferred_element_type=jnp.float32)
    h = jnp.maximum(h + b1_ref[...], 0.0)            # bias + ReLU in f32
    h = h.astype(w2_ref.dtype)                       # bf16 feed if weights are bf16
    out = jnp.dot(h, w2_ref[...], preferred_element_type=jnp.float32) + b2_ref[...]
    o_ref[...] = out.astype(o_ref.dtype)


def _round_up(x, m):
    return (x + m - 1) // m * m


@functools.partial(jax.jit, static_argnames=("block_batch", "use_bf16_matmul"))
def tower_forward(x, w1, b1, w2, b2, *, block_batch=512, use_bf16_matmul=False):
    B, D_in = x.shape
    H = w1.shape[1]
    D_out = w2.shape[1]

    # --- Lane-dense padding of the feature axes (weights/bias only, exact). ---
    H_p = _round_up(H, 128)
    D_out_p = _round_up(D_out, 128)
    w1_p = jnp.pad(w1, ((0, 0), (0, H_p - H)))
    b1_p = jnp.pad(b1.reshape(1, H).astype(jnp.float32), ((0, 0), (0, H_p - H)))
    w2_p = jnp.pad(w2, ((0, H_p - H), (0, D_out_p - D_out)))
    b2_p = jnp.pad(b2.reshape(1, D_out).astype(jnp.float32),
                   ((0, 0), (0, D_out_p - D_out)))

    # --- Batch tiling: clamp tile to the 8-aligned batch, pad to a full grid. ---
    bb = min(block_batch, _round_up(B, 8))
    B_p = _round_up(B, bb)
    x_p = jnp.pad(x, ((0, B_p - B), (0, 0)))

    mat_dtype = jnp.bfloat16 if use_bf16_matmul else x.dtype
    x_p = x_p.astype(mat_dtype)
    w1_p = w1_p.astype(mat_dtype)
    w2_p = w2_p.astype(mat_dtype)

    grid = (B_p // bb,)
    flops = 2 * B_p * (D_in * H_p + H_p * D_out_p)
    bytes_accessed = (
        x_p.size * x_p.dtype.itemsize
        + w1_p.size * w1_p.dtype.itemsize + b1_p.size * 4
        + w2_p.size * w2_p.dtype.itemsize + b2_p.size * 4
        + B_p * D_out_p * 4
    )

    out_p = pl.pallas_call(
        tower_kernel,
        out_shape=jax.ShapeDtypeStruct((B_p, D_out_p), jnp.float32),
        grid_spec=pltpu.PrefetchScalarGridSpec(
            num_scalar_prefetch=0,
            grid=grid,
            in_specs=[
                pl.BlockSpec((bb, D_in), lambda i: (i, 0)),
                pl.BlockSpec((D_in, H_p), lambda i: (0, 0)),
                pl.BlockSpec((1, H_p), lambda i: (0, 0)),
                pl.BlockSpec((H_p, D_out_p), lambda i: (0, 0)),
                pl.BlockSpec((1, D_out_p), lambda i: (0, 0)),
            ],
            out_specs=pl.BlockSpec((bb, D_out_p), lambda i: (i, 0)),
        ),
        compiler_params=pltpu.CompilerParams(
            dimension_semantics=("parallel",),
        ),
        cost_estimate=pl.CostEstimate(
            flops=flops, transcendentals=0, bytes_accessed=bytes_accessed
        ),
    )(x_p, w1_p, b1_p, w2_p, b2_p)

    # Slice away batch / lane padding.
    return out_p[:B, :D_out]


def init_tower_params(key, input_size, output_size, hidden_size):
    """Deterministic init mimicking nn.Linear's U(-1/sqrt(fan_in), 1/sqrt(fan_in))."""
    k1, k2, k3, k4 = jax.random.split(key, 4)
    lim1 = 1.0 / jnp.sqrt(input_size)
    lim2 = 1.0 / jnp.sqrt(hidden_size)
    # stored as (in, out)  == torch weight (out, in) transposed
    w1 = jax.random.uniform(k1, (input_size, hidden_size), jnp.float32, -lim1, lim1)
    b1 = jax.random.uniform(k2, (1, hidden_size), jnp.float32, -lim1, lim1)
    w2 = jax.random.uniform(k3, (hidden_size, output_size), jnp.float32, -lim2, lim2)
    b2 = jax.random.uniform(k4, (1, output_size), jnp.float32, -lim2, lim2)
    return w1, b1, w2, b2


def tower_reference(x, w1, b1, w2, b2):
    h = jnp.maximum(x @ w1 + b1, 0.0)
    return h @ w2 + b2


if __name__ == "__main__":
    # Small shapes consistent with the module: Tower(input_size=32, output_size=8, hidden_size=64)
    input_size, hidden_size, output_size = 32, 64, 8

    key = jax.random.PRNGKey(0)
    kx, kx2, kp = jax.random.split(key, 3)
    w1, b1, w2, b2 = init_tower_params(kp, input_size, output_size, hidden_size)

    # --- Case 1: tiny batch (f32), strict check vs. reference. ---
    batch = 8
    x = jax.random.normal(kx, (batch, input_size), jnp.float32)
    out = jax.block_until_ready(tower_forward(x, w1, b1, w2, b2))
    ref = tower_reference(x, w1, b1, w2, b2)
    assert out.shape == (batch, output_size)
    assert jnp.allclose(out, ref, atol=1e-5, rtol=1e-5), "f32 mismatch vs reference"

    # --- Case 2: non-divisible batch, exercises padding + multi-step grid. ---
    batch2 = 300
    x2 = jax.random.normal(kx2, (batch2, input_size), jnp.float32)
    out2 = jax.block_until_ready(
        tower_forward(x2, w1, b1, w2, b2, block_batch=256)
    )
    ref2 = tower_reference(x2, w1, b1, w2, b2)
    assert out2.shape == (batch2, output_size)
    assert jnp.allclose(out2, ref2, atol=1e-5, rtol=1e-5), "padded-batch mismatch"

    # --- Case 3: bf16 matmul operands (v6e/v7x fast path), looser tolerance. ---
    out3 = jax.block_until_ready(
        tower_forward(x2, w1, b1, w2, b2, block_batch=256, use_bf16_matmul=True)
    )
    assert out3.shape == (batch2, output_size)
    assert jnp.allclose(out3, ref2, atol=5e-2, rtol=5e-2), "bf16 mismatch vs reference"

    print("KERNEL_OK")
</pallas_src>

<mosaic_0001>
module attributes {stable_mosaic.version = 11 : i64} {
  func.func @tower_kernel(%arg0: i32, %arg1: memref<8x32xf32, #tpu.memory_space<vmem>>, %arg2: memref<32x128xf32, #tpu.memory_space<vmem>>, %arg3: memref<1x128xf32, #tpu.memory_space<vmem>>, %arg4: memref<128x128xf32, #tpu.memory_space<vmem>>, %arg5: memref<1x128xf32, #tpu.memory_space<vmem>>, %arg6: memref<8x128xf32, #tpu.memory_space<vmem>>) attributes {dimension_semantics = [#tpu.dimension_semantics<parallel>], iteration_bounds = array<i64: 1>, scalar_prefetch = 0 : i64, scratch_operands = 0 : i64, tpu.core_type = #tpu.core_type<tc>, window_params = [{transform_indices = @transform_0, window_bounds = array<i64: 8, 32>}, {pipeline_mode = #tpu.pipeline_mode<synchronous>, transform_indices = @transform_1, window_bounds = array<i64: 32, 128>}, {pipeline_mode = #tpu.pipeline_mode<synchronous>, transform_indices = @transform_2, window_bounds = array<i64: 1, 128>}, {pipeline_mode = #tpu.pipeline_mode<synchronous>, transform_indices = @transform_3, window_bounds = array<i64: 128, 128>}, {pipeline_mode = #tpu.pipeline_mode<synchronous>, transform_indices = @transform_4, window_bounds = array<i64: 1, 128>}, {transform_indices = @transform_5, window_bounds = array<i64: 8, 128>}]} {
    %c0 = arith.constant 0 : index
    %c0_0 = arith.constant 0 : index
    %0 = vector.load %arg1[%c0, %c0_0] : memref<8x32xf32, #tpu.memory_space<vmem>>, vector<8x32xf32>
    %c0_1 = arith.constant 0 : index
    %c0_2 = arith.constant 0 : index
    %1 = vector.load %arg2[%c0_1, %c0_2] : memref<32x128xf32, #tpu.memory_space<vmem>>, vector<32x128xf32>
    %cst = arith.constant dense<0.000000e+00> : vector<8x128xf32>
    %2 = tpu.matmul %0, %1, %cst {dimension_numbers = #tpu.dot_dimension_numbers<[1], [0], [0], [1], [0, 0, 1, 1], [], []>} : vector<8x32xf32>, vector<32x128xf32>, vector<8x128xf32> -> vector<8x128xf32>
    %c0_3 = arith.constant 0 : index
    %c0_4 = arith.constant 0 : index
    %3 = vector.load %arg3[%c0_3, %c0_4] : memref<1x128xf32, #tpu.memory_space<vmem>>, vector<1x128xf32>
    %4 = vector.broadcast %3 : vector<1x128xf32> to vector<8x128xf32>
    %5 = arith.addf %2, %4 : vector<8x128xf32>
    %cst_5 = arith.constant 0.000000e+00 : f32
    %6 = vector.broadcast %cst_5 : f32 to vector<8x128xf32>
    %7 = arith.maximumf %5, %6 : vector<8x128xf32>
    %c0_6 = arith.constant 0 : index
    %c0_7 = arith.constant 0 : index
    %8 = vector.load %arg4[%c0_6, %c0_7] : memref<128x128xf32, #tpu.memory_space<vmem>>, vector<128x128xf32>
    %cst_8 = arith.constant dense<0.000000e+00> : vector<8x128xf32>
    %9 = tpu.matmul %7, %8, %cst_8 {dimension_numbers = #tpu.dot_dimension_numbers<[1], [0], [0], [1], [0, 0, 1, 1], [], []>} : vector<8x128xf32>, vector<128x128xf32>, vector<8x128xf32> -> vector<8x128xf32>
    %c0_9 = arith.constant 0 : index
    %c0_10 = arith.constant 0 : index
    %10 = vector.load %arg5[%c0_9, %c0_10] : memref<1x128xf32, #tpu.memory_space<vmem>>, vector<1x128xf32>
    %11 = vector.broadcast %10 : vector<1x128xf32> to vector<8x128xf32>
    %12 = arith.addf %9, %11 : vector<8x128xf32>
    %c0_11 = arith.constant 0 : index
    %c0_12 = arith.constant 0 : index
    %13 = vector.load %arg6[%c0_11, %c0_12] : memref<8x128xf32, #tpu.memory_space<vmem>>, vector<8x128xf32>
    tpu.vector_store %arg6[%c0_11, %c0_12], %12 {strides = array<i32>} : memref<8x128xf32, #tpu.memory_space<vmem>>, vector<8x128xf32>,
    return
  }
  func.func @transform_0(%arg0: i32) -> (i32, i32) {
    %c0_i32 = arith.constant 0 : i32
    %c0_i32_0 = arith.constant 0 : i32
    return %arg0, %c0_i32 : i32, i32
  }
  func.func @transform_1(%arg0: i32) -> (i32, i32) {
    %c0_i32 = arith.constant 0 : i32
    %c0_i32_0 = arith.constant 0 : i32
    %c0_i32_1 = arith.constant 0 : i32
    return %c0_i32, %c0_i32_0 : i32, i32
  }
  func.func @transform_2(%arg0: i32) -> (i32, i32) {
    %c0_i32 = arith.constant 0 : i32
    %c0_i32_0 = arith.constant 0 : i32
    %c0_i32_1 = arith.constant 0 : i32
    return %c0_i32, %c0_i32_0 : i32, i32
  }
  func.func @transform_3(%arg0: i32) -> (i32, i32) {
    %c0_i32 = arith.constant 0 : i32
    %c0_i32_0 = arith.constant 0 : i32
    %c0_i32_1 = arith.constant 0 : i32
    return %c0_i32, %c0_i32_0 : i32, i32
  }
  func.func @transform_4(%arg0: i32) -> (i32, i32) {
    %c0_i32 = arith.constant 0 : i32
    %c0_i32_0 = arith.constant 0 : i32
    %c0_i32_1 = arith.constant 0 : i32
    return %c0_i32, %c0_i32_0 : i32, i32
  }
  func.func @transform_5(%arg0: i32) -> (i32, i32) {
    %c0_i32 = arith.constant 0 : i32
    %c0_i32_0 = arith.constant 0 : i32
    return %arg0, %c0_i32 : i32, i32
  }
}

</mosaic_0001>

<bundles_post_ra>
// kernel: tower_forward.1
= control target key start
LH: loop header
LB: loop body
LE: loop exit
PB: predicated region body
PF: predicated region fallthrough
CT: control target
= control target key end

     0   :  { %vm30_vm0 = vcmask 261120   ;;  %s245_s0 = inlined_call_operand.vmem [shape: f32[8,32], index: 0, kind: input, shape index: {}]   ;;  %s246_s1 = inlined_call_operand.vmem [shape: f32[32,128], index: 1, kind: input, shape index: {}]   ;;  %s247_s2 = inlined_call_operand.vmem [shape: f32[1,128], index: 2, kind: input, shape index: {}]   ;;  %s248_s3 = inlined_call_operand.vmem [shape: f32[128,128], index: 3, kind: input, shape index: {}]   ;;  %s249_s4 = inlined_call_operand.vmem [shape: f32[1,128], index: 4, kind: input, shape index: {}]   ;;  %s250_s5 = inlined_call_operand.hbm [shape: f32[8,128], index: 5, kind: output, shape index: {}]  }
   0x1   :  { %v25_v0 = vld [vmem:[%s246_s1 + $0x18] sm:$0xff]  ;;  %v24_v1 = vld [vmem:[%s246_s1 + $0x10] sm:$0xff]  ;;  %v23_v3 = vld [vmem:[%s246_s1 + $0x8] sm:$0xff] }
   0x2   :  { %46 = vmatpush.msra.mxu0 %v25_v0  ;;  %v70_v2 = vld [vmem:[%s248_s3 + $0x78] sm:$0xff]  ;;  %v69_v4 = vld [vmem:[%s248_s3 + $0x70] sm:$0xff]  ;;  %v68_v5 = vld [vmem:[%s248_s3 + $0x68] sm:$0xff] }
   0x3   :  { %75 = vmatpush.msra.mxu1 %v70_v2  ;;  %v22_v6 = vld [vmem:[%s246_s1] sm:$0xff]  ;;  %v66_v9 = vld [vmem:[%s248_s3 + $0x58] sm:$0xff] }
   0x4   :  { %47 = vmatpush.msra.mxu0 %v24_v1  ;;  %v21_v7 = vld [vmem:[%s245_s0] sm:$0xff] }
   0x5   :  { %76 = vmatpush.msra.mxu1 %v69_v4  ;;  %v67_v8 = vld [vmem:[%s248_s3 + $0x60] sm:$0xff] }
   0x6   :  { %48 = vmatpush.msra.mxu0 %v23_v3 }
   0x7   :  { %77 = vmatpush.msra.mxu1 %v68_v5 }
   0x8   :  { %49 = vmatpush.msra.mxu0 %v22_v6 }
   0x9   :  { %10 = vsyncpa [#allocation3], 0  ;;  %112 = vmatmul.msk.f32.vlgmr.msra.gmra.mxu0 %vm30_vm0, %v21_v7  ;;  %78 = vmatpush.msra.mxu1 %v67_v8  ;;  %v65_v10 = vld [vmem:[%s248_s3 + $0x50] sm:$0xff]  ;;  %v64_v11 = vld [vmem:[%s248_s3 + $0x48] sm:$0xff]  ;;  %s142_s12 = smov [#allocation2]   ;;  %s103_s14 = sshll.u32 %s250_s5, 4  ;;  %s104_s14 = int_to_ptr.hbm [resolvable:$true] %s103_s14 }
   0xa   :  { %v63_v12 = vld [vmem:[%s248_s3 + $0x40] sm:$0xff]  ;;  %v62_v13 = vld [vmem:[%s248_s3 + $0x38] sm:$0xff]  ;;  %v61_v14 = vld [vmem:[%s248_s3 + $0x30] sm:$0xff]  ;;  %s101_s1 = sshll.u32 %s142_s12, 4  ;;  %s102_s1 = int_to_ptr.vmem [resolvable:$true] %s101_s1 }
   0xb   :  { %79 = vmatpush.msra.mxu1 %v66_v9  ;;  %v60_v15 = vld [vmem:[%s248_s3 + $0x28] sm:$0xff]  ;;  %v59_v16 = vld [vmem:[%s248_s3 + $0x20] sm:$0xff]  ;;  %v58_v17 = vld [vmem:[%s248_s3 + $0x18] sm:$0xff] }
   0xc   :  { %v57_v18 = vld [vmem:[%s248_s3 + $0x10] sm:$0xff]  ;;  %v56_v19 = vld [vmem:[%s248_s3 + $0x8] sm:$0xff]  ;;  %v55_v20 = vld [vmem:[%s248_s3] sm:$0xff] }
   0xd   :  { %80 = vmatpush.msra.mxu1 %v65_v10  ;;  %v114_v21 = vld [vmem:[%s247_s2] ss:$0 sm:$0xff] }
   0xe   :  { %v115_v25 = vld [vmem:[%s249_s4] ss:$0 sm:$0xff] }
   0xf   :  { %81 = vmatpush.msra.mxu1 %v64_v11 }
  0x11   :  { %82 = vmatpush.msra.mxu1 %v63_v12 }
  0x13   :  { %83 = vmatpush.msra.mxu1 %v62_v13 }
  0x15   :  { %84 = vmatpush.msra.mxu1 %v61_v14 }
  0x17   :  { %85 = vmatpush.msra.mxu1 %v60_v15 }
  0x19   :  { %86 = vmatpush.msra.mxu1 %v59_v16 }
  0x1b   :  { %87 = vmatpush.msra.mxu1 %v58_v17 }
  0x1d   :  { %88 = vmatpush.msra.mxu1 %v57_v18 }
  0x1f   :  { %89 = vmatpush.msra.mxu1 %v56_v19 }
  0x21   :  { %90 = vmatpush.msra.mxu1 %v55_v20 }
  0x86   :  { %v51_v22 = vpop.f32.mrf.mxu0 }
  0x87   :  { %v52_v23 = vadd.f32 %v114_v21, %v51_v22 }
  0x89   :  { %v54_v24 = vmax.f32 %v52_v23, 0.0 }
  0x8b   :  { %91 = vmatmul.f32.vlgmr.msra.gmra.mxu1 %v54_v24 }
 0x108   :  { %v92_v26 = vpop.f32.mrf.mxu1 }
 0x109   :  { %v93_v27 = vadd.f32 %v115_v25, %v92_v26 }
 0x10b   :  { %95 = vst [vmem:[#allocation2] sm:$0xff] %v93_v27 }
 0x10c   :  { %106 = dma.vmem_to_hbm [thread:$0]  %s102_s1, 128, %s104_s14, [#allocation3]  }
 0x10d   :  { %140 = dma.done.wait [#allocation3], 128  }
 0x10e   :  { %141 = vsyncadd [#allocation3], 4294967168 }
 0x10f   :  { %111 = vsyncpa [#allocation3], 1 }

</bundles_post_ra>
